<compile_context>
chip_gen: v7x
topology: tpu7x:2x2x1
jax: 0.10.0
libtpu: 0.0.40
codegen_flags: <defaults>
</compile_context>

<pallas_src>
import functools
import math

import numpy as np
import jax
import jax.numpy as jnp
from jax.experimental import pallas as pl
from jax.experimental.pallas import tpu as pltpu


def _round_up(a: int, m: int) -> int:
    return ((a + m - 1) // m) * m


# ----------------------------- Pallas kernel ------------------------------
def _lcl_matmul_kernel(x_ref, w_ref, o_ref, acc_ref):
    # x_ref:  (TB, FT)            input tile (native dtype, e.g. f32)
    # w_ref:  (FT, N_out)         folded dense weight tile (bf16)
    # o_ref:  (TB, N_out)         lane-dense output block (full feature axis)
    # acc_ref:(TB, N_out) f32     VMEM accumulator across the feature grid axis
    k = pl.program_id(1)

    @pl.when(k == 0)
    def _init():
        acc_ref[...] = jnp.zeros_like(acc_ref)

    # bf16 x bf16 -> f32 on the MXU; the x->bf16 cast runs on VMEM data (VPU),
    # so HBM traffic stays at the input dtype (no extra cast pass in HBM).
    acc_ref[...] += jnp.dot(x_ref[...].astype(jnp.bfloat16), w_ref[...],
                            preferred_element_type=jnp.float32)

    @pl.when(k == pl.num_programs(1) - 1)
    def _store():
        o_ref[...] = acc_ref[...].astype(o_ref.dtype)


# ------------------------- folded weight construction -------------------------
def build_dense_lcl_weight(weight: jax.Array, data_shape_chw: tuple,
                           num_chunks: int, split_size: int,
                           dtype=jnp.bfloat16) -> jax.Array:
    """Fold SplitLinear's chunk structure, the Fortran-order flatten permutation
    and the set-major output flatten into one dense (in_features, O*num_chunks)
    matrix.  Weight-sized work, done once at model-build time (host/eager)."""
    O = weight.shape[0]
    C, H, W = data_shape_chw
    in_features = C * H * W
    # Block-diagonal over chunks: rows = Fortran flatten position f = c*K + k,
    # cols = set-major output index j = o*num_chunks + c.
    eye = jnp.eye(num_chunks, dtype=jnp.float32)
    bd = jnp.einsum('ock,cd->ckod', weight.astype(jnp.float32), eye)
    w_fortran = bd.reshape(num_chunks * split_size, O * num_chunks)
    # Row permutation: row g of the C-order flatten (free reshape of NCHW)
    # corresponds to Fortran position f(g).  Rows f >= in_features (SplitLinear's
    # zero padding of x) drop out automatically since x there is zero.
    g = np.arange(in_features)
    c_ch = g // (H * W)
    rem = g - c_ch * (H * W)
    h = rem // W
    w = rem - h * W
    f_of_g = c_ch * (W * H) + w * H + h
    return jnp.take(w_fortran, jnp.asarray(f_of_g), axis=0).astype(dtype)


# ----------------------------- pallas wrapper ------------------------------
def split_linear_dense_pallas(x_flat: jax.Array, w_dense: jax.Array, *,
                              batch_tile: int = 256,
                              feature_tile: int = 512) -> jax.Array:
    """x_flat: (B, in_features) C-order flatten; w_dense: (in_features, N_out)."""
    B, in_features = x_flat.shape
    n_out = w_dense.shape[1]

    # Batch tile: multiple of 16 (bf16-friendly sublanes), 128-512 recommended.
    TB = _round_up(min(batch_tile, B), 16)
    B_pad = _round_up(B, TB)
    if B_pad != B:
        x_flat = jnp.pad(x_flat, ((0, B_pad - B), (0, 0)))

    # Feature (reduction) tile: a multiple of 128 dividing in_features, else the
    # full feature axis in one block (always legal per the (8,128) rule).
    if in_features % 128 == 0:
        FT = min(max(feature_tile // 128, 1) * 128, in_features)
        while in_features % FT:
            FT -= 128
    else:
        FT = in_features

    itemsize_x = jnp.dtype(x_flat.dtype).itemsize
    itemsize_w = jnp.dtype(w_dense.dtype).itemsize
    n_btiles = B_pad // TB
    n_ftiles = in_features // FT

    flops = 2 * B_pad * in_features * n_out
    bytes_accessed = (B_pad * in_features * itemsize_x
                      + w_dense.size * itemsize_w * n_btiles
                      + B_pad * n_out * itemsize_x)

    # VMEM budget: 2x x tile + 2x w tile + 2x out tile + accumulator, headroom x3.
    vmem_need = (2 * TB * FT * itemsize_x + 2 * FT * n_out * itemsize_w
                 + 2 * TB * n_out * itemsize_x + TB * n_out * 4)
    vmem_limit = int(min(64 * 2 ** 20, max(3 * vmem_need, 32 * 2 ** 20)))

    out = pl.pallas_call(
        _lcl_matmul_kernel,
        out_shape=jax.ShapeDtypeStruct((B_pad, n_out), x_flat.dtype),
        grid=(n_btiles, n_ftiles),
        in_specs=[
            pl.BlockSpec((TB, FT), lambda b, k: (b, k)),
            pl.BlockSpec((FT, n_out), lambda b, k: (k, 0)),
        ],
        out_specs=pl.BlockSpec((TB, n_out), lambda b, k: (b, 0)),
        scratch_shapes=[pltpu.VMEM((TB, n_out), jnp.float32)],
        compiler_params=pltpu.CompilerParams(
            dimension_semantics=("parallel", "arbitrary"),
            vmem_limit_bytes=vmem_limit),
        cost_estimate=pl.CostEstimate(
            flops=flops, transcendentals=0, bytes_accessed=bytes_accessed),
    )(x_flat, w_dense)

    return out[:B]


# --------------------------- jitted forward pass ---------------------------
@functools.partial(jax.jit, static_argnames=("batch_tile", "feature_tile"))
def simple_lcl_forward(x, w_dense, *, batch_tile=256, feature_tile=512):
    # C-order flatten of a contiguous NCHW array is a free (bitcast) reshape; the
    # Fortran-order transpose(2,3) flatten is folded into w_dense's row
    # permutation, so x is never rewritten in HBM before the kernel reads it.
    x_flat = x.reshape(x.shape[0], -1)
    return split_linear_dense_pallas(x_flat, w_dense, batch_tile=batch_tile,
                                     feature_tile=feature_tile)


# ------------------------------ model wrapper ------------------------------
def flatten_h_w_fortran(x: jax.Array) -> jax.Array:
    return jnp.transpose(x, (0, 1, 3, 2)).reshape(x.shape[0], -1)


class SimpleLCLModelPallas:
    def __init__(self, fc_repr_dim: int, split_mlp_num_splits: int,
                 data_shape_chw: tuple, key: jax.Array,
                 batch_tile: int = 256, feature_tile: int = 512):
        C, H, W = data_shape_chw
        self.in_features = C * H * W
        self.num_chunks = split_mlp_num_splits
        self.split_size = int(math.ceil(self.in_features / self.num_chunks))
        self.out_feature_sets = fc_repr_dim
        self.batch_tile = batch_tile
        self.feature_tile = feature_tile
        # SplitLinear weight (out_feature_sets, num_chunks, split_size), bias=False.
        self.weight = jax.random.normal(
            key, (fc_repr_dim, self.num_chunks, self.split_size),
            dtype=jnp.float32) * 0.1
        # Folded dense matmul operand (built once, bf16 for the MXU).
        self.w_dense = build_dense_lcl_weight(
            self.weight, data_shape_chw, self.num_chunks, self.split_size)

    def __call__(self, x: jax.Array) -> jax.Array:
        return simple_lcl_forward(x, self.w_dense, batch_tile=self.batch_tile,
                                  feature_tile=self.feature_tile)


# --------------------------- pure-JAX reference ----------------------------
def reference_forward(x, weight, num_chunks, split_size):
    B = x.shape[0]
    flat = flatten_h_w_fortran(x)
    pad = num_chunks * split_size - flat.shape[1]
    flat = jnp.pad(flat, ((0, 0), (0, pad)))
    xr = flat.reshape(B, 1, num_chunks, split_size)
    summed = jnp.sum(xr * weight[None], axis=3)          # (B, O, num_chunks)
    return summed.reshape(B, -1)                         # set-major flatten


if __name__ == "__main__":
    # Small config: B=32, C=4 channels, H=4 (one-hot depth), W=16 "SNPs"
    # -> in_features = 256, num_chunks = 16 -> split_size = 16, O = 8
    # -> N_out = 128 (one full lane width), grid = (2 batch tiles x 2 feature tiles).
    B, C, H, W = 32, 4, 4, 16
    fc_repr_dim = 8            # out_feature_sets
    split_mlp_num_splits = 16  # num_chunks

    key = jax.random.PRNGKey(0)
    k_x, k_w = jax.random.split(key)
    x = jax.random.normal(k_x, (B, C, H, W), dtype=jnp.float32)

    # batch_tile=16 / feature_tile=128 exercise both grid axes at toy size
    # (use the 256/512 defaults for realistic batches / feature counts).
    model = SimpleLCLModelPallas(fc_repr_dim, split_mlp_num_splits, (C, H, W),
                                 k_w, batch_tile=16, feature_tile=128)

    out = jax.block_until_ready(model(x))

    ref = reference_forward(x, model.weight, model.num_chunks, model.split_size)
    assert out.shape == (B, fc_repr_dim * split_mlp_num_splits), out.shape
    # bf16 MXU inputs with f32 accumulation -> slightly relaxed tolerance.
    assert jnp.allclose(out, ref, atol=2e-2, rtol=2e-2), "mismatch vs reference"

    print("KERNEL_OK")
</pallas_src>

<mosaic_0001>
module attributes {stable_mosaic.version = 11 : i64} {
  func.func @_lcl_matmul_kernel(%arg0: i32, %arg1: i32, %arg2: memref<16x128xf32, #tpu.memory_space<vmem>>, %arg3: memref<128x128xbf16, #tpu.memory_space<vmem>>, %arg4: memref<16x128xf32, #tpu.memory_space<vmem>>, %arg5: memref<16x128xf32, #tpu.memory_space<vmem>>) attributes {dimension_semantics = [#tpu.dimension_semantics<parallel>, #tpu.dimension_semantics<arbitrary>], iteration_bounds = array<i64: 2, 2>, scalar_prefetch = 0 : i64, scratch_operands = 1 : i64, tpu.core_type = #tpu.core_type<tc>, window_params = [{transform_indices = @transform_0, window_bounds = array<i64: 16, 128>}, {transform_indices = @transform_1, window_bounds = array<i64: 128, 128>}, {transform_indices = @transform_2, window_bounds = array<i64: 16, 128>}]} {
    %c0_i32 = arith.constant 0 : i32
    %0 = arith.cmpi eq, %arg1, %c0_i32 : i32
    %1 = arith.extui %0 : i1 to i32
    %c0_i32_0 = arith.constant 0 : i32
    %2 = arith.cmpi ne, %1, %c0_i32_0 : i32
    scf.if %2 {
      %cst_9 = arith.constant 0.000000e+00 : f32
      %13 = vector.broadcast %cst_9 : f32 to vector<16x128xf32>
      %c0_10 = arith.constant 0 : index
      %c0_11 = arith.constant 0 : index
      %14 = vector.load %arg5[%c0_10, %c0_11] : memref<16x128xf32, #tpu.memory_space<vmem>>, vector<16x128xf32>
      tpu.vector_store %arg5[%c0_10, %c0_11], %13 {strides = array<i32>} : memref<16x128xf32, #tpu.memory_space<vmem>>, vector<16x128xf32>,
    } else {
    }
    %c0 = arith.constant 0 : index
    %c0_1 = arith.constant 0 : index
    %3 = vector.load %arg5[%c0, %c0_1] : memref<16x128xf32, #tpu.memory_space<vmem>>, vector<16x128xf32>
    %c0_2 = arith.constant 0 : index
    %c0_3 = arith.constant 0 : index
    %4 = vector.load %arg2[%c0_2, %c0_3] : memref<16x128xf32, #tpu.memory_space<vmem>>, vector<16x128xf32>
    %5 = arith.truncf %4 : vector<16x128xf32> to vector<16x128xbf16>
    %c0_4 = arith.constant 0 : index
    %c0_5 = arith.constant 0 : index
    %6 = vector.load %arg3[%c0_4, %c0_5] : memref<128x128xbf16, #tpu.memory_space<vmem>>, vector<128x128xbf16>
    %cst = arith.constant dense<0.000000e+00> : vector<16x128xf32>
    %7 = tpu.matmul %5, %6, %cst {dimension_numbers = #tpu.dot_dimension_numbers<[1], [0], [0], [1], [0, 0, 1, 1], [], []>} : vector<16x128xbf16>, vector<128x128xbf16>, vector<16x128xf32> -> vector<16x128xf32>
    %8 = arith.addf %3, %7 : vector<16x128xf32>
    %c0_6 = arith.constant 0 : index
    %c0_7 = arith.constant 0 : index
    %9 = vector.load %arg5[%c0_6, %c0_7] : memref<16x128xf32, #tpu.memory_space<vmem>>, vector<16x128xf32>
    tpu.vector_store %arg5[%c0_6, %c0_7], %8 {strides = array<i32>} : memref<16x128xf32, #tpu.memory_space<vmem>>, vector<16x128xf32>,
    %c1_i32 = arith.constant 1 : i32
    %10 = arith.cmpi eq, %arg1, %c1_i32 : i32
    %11 = arith.extui %10 : i1 to i32
    %c0_i32_8 = arith.constant 0 : i32
    %12 = arith.cmpi ne, %11, %c0_i32_8 : i32
    scf.if %12 {
      %c0_9 = arith.constant 0 : index
      %c0_10 = arith.constant 0 : index
      %13 = vector.load %arg5[%c0_9, %c0_10] : memref<16x128xf32, #tpu.memory_space<vmem>>, vector<16x128xf32>
      %c0_11 = arith.constant 0 : index
      %c0_12 = arith.constant 0 : index
      %14 = vector.load %arg4[%c0_11, %c0_12] : memref<16x128xf32, #tpu.memory_space<vmem>>, vector<16x128xf32>
      tpu.vector_store %arg4[%c0_11, %c0_12], %13 {strides = array<i32>} : memref<16x128xf32, #tpu.memory_space<vmem>>, vector<16x128xf32>,
    } else {
    }
    return
  }
  func.func @transform_0(%arg0: i32, %arg1: i32) -> (i32, i32) {
    %c0_i32 = arith.constant 0 : i32
    return %arg0, %arg1 : i32, i32
  }
  func.func @transform_1(%arg0: i32, %arg1: i32) -> (i32, i32) {
    %c0_i32 = arith.constant 0 : i32
    %c0_i32_0 = arith.constant 0 : i32
    return %arg1, %c0_i32 : i32, i32
  }
  func.func @transform_2(%arg0: i32, %arg1: i32) -> (i32, i32) {
    %c0_i32 = arith.constant 0 : i32
    %c0_i32_0 = arith.constant 0 : i32
    return %arg0, %c0_i32 : i32, i32
  }
}

</mosaic_0001>

<bundles_post_ra>
// kernel: simple_lcl_forward.1
= control target key start
LH: loop header
LB: loop body
LE: loop exit
PB: predicated region body
PF: predicated region fallthrough
CT: control target
= control target key end

     0   :  { %7 = vsyncpa [#allocation5], 0  ;;  %s950_s0 = inlined_call_operand.vmem [shape: f32[32,256], index: 0, kind: input, shape index: {}]   ;;  %s951_s1 = inlined_call_operand.vmem [shape: bf16[256,128], index: 1, kind: input, shape index: {}]   ;;  %s952_s2 = inlined_call_operand.hbm [shape: f32[32,128], index: 2, kind: output, shape index: {}]  }
   0x1   :  { %9 = vsyncpa [#allocation5 + $0x1], 0  ;;  %s749_s9 = smov 0   ;;  %s751_s10 = smov 0  }
   0x2   :  { %s753_s11 = smov 0   ;;  %s755_s12 = smov 0  }
   0x3   :  { %s757_s13 = smov 0   ;;  %s759_s14 = smov 0  }
   0x4   :  { %s761_s15 = smov 0   ;;  %s763_s16 = smov 0  }
   0x5   :  { %s765_s17 = smov 0   ;;  %s767_s18 = smov 0  }
   0x6 LB: > { %s457_s19 = sadd.s32 4294967295, %s726_s18   ;;  %s458_s20 = sadd.s32 4294967294, %s726_s18   ;;  %s726_s18 = sphi %s767_s18, %s15_s18   ;;  %s722_s17 = sphi %s765_s17, %s964_s17   ;;  %s718_s16 = sphi %s763_s16, %s963_s16   ;;  %s714_s15 = sphi %s761_s15, %s962_s15   ;;  %s710_s14 = sphi %s759_s14, %s961_s14   ;;  %s706_s13 = sphi %s757_s13, %s960_s13   ;;  %s702_s12 = sphi %s755_s12, %s959_s12   ;;  %s698_s11 = sphi %s753_s11, %s958_s11   ;;  %s694_s10 = sphi %s751_s10, %s957_s10   ;;  %s690_s9 = sphi %s749_s9, %s956_s9  }
   0x7   : > { %s24_s21 = sadd.s32 1, %s718_s16  ;;  %s27_s22 = sadd.s32 1, %s722_s17 }
   0x8   : > { %p25_p0 = scmp.ge.s32.totalorder %s24_s21, 2  ;;  %s36_s23 = sadd.s32 1, %s706_s13 }
   0x9   : > { %p43_p1 = scmp.ne.s32.totalorder %s706_s13, %s702_s12  ;;  %p44_p2 = scmp.eq.s32.totalorder %s726_s18, 0 }
   0xa   : > { %s966_s21 = smov (%p25_p0, %s24_s21), 0  ;;  %s968_s22 = smov (!%p25_p0, %s27_s22), %s722_s17 }
   0xb   : > { %s32_s24 = ssub.s32 %s718_s16, %s966_s21  ;;  %p812_p3 = por %p44_p2, %p43_p1 }
   0xc   : > { %p29_p4 = scmp.ge.s32.totalorder %s968_s22, 2  ;;  %s88_s26 = sadd.s32 1, %s698_s11 }
   0xd   : > { %p98_p5 = scmp.ne.s32.totalorder %s698_s11, %s694_s10  ;;  %p99_p6 = scmp.eq.s32.totalorder %s457_s19, 3 }
   0xe   : > { %s970_s22 = smov (%p29_p4, %s968_s22), 0  ;;  %p104_p8 = scmp.ne.s32.totalorder %s694_s10, %s690_s9 }
   0xf   : > { %p821_p7 = por %p99_p6, %p98_p5  ;;  %s31_s28 = ssub.s32 %s722_s17, %s970_s22 }
  0x10   : > { %p105_p9 = scmp.eq.s32.totalorder %s458_s20, 3  ;;  %s33_s29 = sor.u32 %s32_s24, %s31_s28 }
  0x11   : > { %p86_p10 = scmp.eq.s32.totalorder %s31_s28, 0  ;;  %p34_p11 = scmp.eq.s32.totalorder %s33_s29, 0 }
  0x12   : > { %p829_p12 = por %p105_p9, %p104_p8  ;;  %p460_p13 = scmp.ge.s32.totalorder %s726_s18, 4 }
  0x13   : > { %s834_s3 = scalar_select %p86_p10, %s698_s11, %s88_s26  }
  0x14   : > { %s837_s4 = scalar_select %p34_p11, %s706_s13, %s36_s23  }
  0x15   : > { %121 = sbr.rel (%p460_p13) target bundleno = 35 (0x23), region = 16 }
  0x1c   : > { %124 = sbr.rel (!%p812_p3) target bundleno = 35 (0x23), region = 20  ;;  %s126_s5 = sand.u32 (%p812_p3), 1, %s706_s13  }
  0x1d   : > { %s485_s6 = sshll.u32 (%p812_p3), %s722_s17, 2  ;;  %s461_s7 = sshll.u32 (%p812_p3), %s126_s5, 4 }
  0x1e   : > { %s131_s8 = sadd.s32 (%p812_p3), %s718_s16, %s485_s6  ;;  %s128_s23 = scalar_lea.vmem (%p812_p3), [#allocation3], %s461_s7 }
  0x1f   : > { %s464_s19 = sshll.u32 (%p812_p3), %s131_s8, 3 }
  0x20   : > { %s133_s26 = scalar_lea.vmem (%p812_p3), %s950_s0, %s464_s19 }
  0x21   : > { %v163_v0 = vld [vmem:[%s133_s26] sm:$0xff] (%p812_p3)  ;;  %v165_v1 = vld [vmem:[%s133_s26 + $0x10] sm:$0xff] (%p812_p3) }
  0x22   : > { %164 = vst [vmem:[%s128_s23] sm:$0xff] (%p812_p3), %v163_v0  ;;  %166 = vst [vmem:[%s128_s23 + $0x8] sm:$0xff] (%p812_p3), %v165_v1 }
  0x23 PF: > { %p465_p0 = scmp.ge.s32.totalorder %s726_s18, 1  ;;  %p180_p1 = scmp.lt.s32.totalorder %s726_s18, 5 }
  0x25   : > { %p181_p2 = pnand %p465_p0, %p180_p1 }
  0x26   : > { %s187_s25 = sand.u32 (!%p181_p2), 1, %s702_s12   ;;  %s210_s28 = sand.u32 (!%p181_p2), 1, %s694_s10  }
  0x27   : > { %184 = sbr.rel (%p181_p2) target bundleno = 336 (0x150), region = 62  ;;  %s852_s29 = sshll.u32 (!%p181_p2), %s187_s25, 4 }
  0x28   : > { %s467_s5 = sshll.u32 (!%p181_p2), %s210_s28, 4  ;;  %s468_s6 = sshll.u32 (!%p181_p2), %s710_s14, 4 }
  0x29   : > { %p215_p3 = scmp.lt.s32.totalorder (!%p181_p2), %s468_s6, 31  ;;  %s189_s24 = scalar_lea.vmem (!%p181_p2), [#allocation3], %s852_s29 }
  0x2a   : > { %s863_s26 = scalar_lea.vmem (!%p181_p2), [#allocation4], %s467_s5  ;;  %p470_p4 = scmp.ne.s32.totalorder (!%p181_p2), %s710_s14, 0 }
  0x2e   : > { %s972_s6 = smov (!%p215_p3, %s468_s6), 31  ;;  %225 = sbr.rel (%p470_p4) target bundleno = 53 (0x35), region = 70 }
  0x2f   : > { %s469_s7 = sshll.u32 %s972_s6, 2  ;;  %v728_v2 = vmov (!%p470_p4), 0.0  }
  0x30   : > { %s860_s20 = scalar_lea.vmem %s951_s1, %s469_s7  ;;  %226 = vst [vmem:[#allocation2] sm:$0xff] (!%p470_p4), %v728_v2  ;;  %227 = vst [vmem:[#allocation2 + $0x8] sm:$0xff] (!%p470_p4), %v728_v2 }
  0x35 PF: > { %v608_v3 = vld [vmem:[%s860_s20] sm:$0xff]   ;;  %v729_v4 = vmov 0.0   ;;  %v609_v5 = vld [vmem:[%s860_s20 + $0x8] sm:$0xff]   ;;  %vm730_vm0 = vmmov 0   ;;  %v610_v6 = vld [vmem:[%s860_s20 + $0x10] sm:$0xff]   ;;  %p479_p5 = scmp.ne.s32.totalorder %s710_s14, 1 }
  0x36   : > { %496 = vmatprep.subr.bf16.mxu0 %v729_v4  ;;  %512 = vmatprep.mubr.msk.bf16.mxu0 %vm730_vm0, %v729_v4  ;;  %v611_v7 = vld [vmem:[%s860_s20 + $0x18] sm:$0xff]   ;;  %v612_v8 = vld [vmem:[%s860_s20 + $0x20] sm:$0xff]   ;;  %v613_v9 = vld [vmem:[%s860_s20 + $0x28] sm:$0xff]  }
  0x37   : > { %497 = vmatpush3.bf16.msra.mxu0 %v608_v3  ;;  %v614_v10 = vld [vmem:[%s860_s20 + $0x30] sm:$0xff]   ;;  %v615_v11 = vld [vmem:[%s860_s20 + $0x38] sm:$0xff]   ;;  %v228_v15 = vld [vmem:[#allocation2] sm:$0xff] }
  0x38   : > { %498 = vmatprep.subr.bf16.mxu0 %v729_v4  ;;  %v230_v12 = vld [vmem:[%s189_s24] sm:$0xff]  ;;  %v231_v13 = vld [vmem:[%s189_s24 + $0x8] sm:$0xff] }
  0x39   : > { %v232_v14 = vpack.c.bf16 %v231_v13, %v230_v12  ;;  %v229_v17 = vld [vmem:[#allocation2 + $0x8] sm:$0xff] }
  0x3b   : > { %499 = vmatpush3.bf16.msra.mxu0 %v609_v5 }
  0x3c   : > { %500 = vmatprep.subr.bf16.mxu0 %v729_v4 }
  0x3f   : > { %501 = vmatpush3.bf16.msra.mxu0 %v610_v6 }
  0x40   : > { %502 = vmatprep.subr.bf16.mxu0 %v729_v4 }
  0x43   : > { %503 = vmatpush3.bf16.msra.mxu0 %v611_v7 }
  0x44   : > { %504 = vmatprep.subr.bf16.mxu0 %v729_v4 }
  0x47   : > { %505 = vmatpush3.bf16.msra.mxu0 %v612_v8 }
  0x48   : > { %506 = vmatprep.subr.bf16.mxu0 %v729_v4 }
  0x4b   : > { %507 = vmatpush3.bf16.msra.mxu0 %v613_v9 }
  0x4c   : > { %508 = vmatprep.subr.bf16.mxu0 %v729_v4 }
  0x4f   : > { %509 = vmatpush3.bf16.msra.mxu0 %v614_v10 }
  0x50   : > { %510 = vmatprep.subr.bf16.mxu0 %v729_v4 }
  0x53   : > { %511 = vmatpush3.bf16.msra.mxu0 %v615_v11 }
  0x56   : > { %513 = vmatmul.mubr.bf16.vlgmr.msra.gmra.mrb[0].mxu0 %v232_v14 }
 0x128   : > { %345 = sbr.rel (%p479_p5) target bundleno = 311 (0x137), region = 74 }
 0x129   : > { %v331_v16 = vpop.f32.mrb[0].mxu0 }
 0x12a   : > { %v338_v18 = vadd.f32 %v331_v16, %v228_v15  ;;  %v514_v19 = vpop.f32.mrb[1].mxu0 }
 0x12b   : > { %v334_v20 = vpop.f32.mrb[2].mxu0 }
 0x12c   : > { %340 = vst [vmem:[#allocation2] sm:$0xff] %v338_v18  ;;  %v339_v21 = vadd.f32 %v334_v20, %v229_v17  ;;  %v515_v22 = vpop.f32.mrb[3].mxu0 }
 0x12e   : > { %341 = vst [vmem:[#allocation2 + $0x8] sm:$0xff] %v339_v21 }
 0x133   : > { %v346_v23 = vld [vmem:[#allocation2] sm:$0xff] }
 0x134   : > { %348 = vst [vmem:[%s863_s26] sm:$0xff] %v346_v23 }
 0x135   : > { %v347_v24 = vld [vmem:[#allocation2 + $0x8] sm:$0xff] }
 0x136   : > { %349 = vst [vmem:[%s863_s26 + $0x8] sm:$0xff] %v347_v24 }
 0x137 PF: > { %s486_s12 = sshll.u32 %s714_s15, 8  ;;  %s364_s5 = sshll.u32 %s863_s26, 4  ;;  %s888_s5 = int_to_ptr.vmem [resolvable:$true] %s364_s5 }
 0x138   : > { %s885_s29 = scalar_lea.hbm %s952_s2, %s486_s12  ;;  %s892_s14 = scalar_lea.sflag [#allocation5], %s210_s28 }
 0x139   : > { %s616_s6 = scalar_lea.vmem %s888_s5, 256  ;;  %s731_s15 = smov [#allocation4]  }
 0x13a   : > { %p617_p6 = scmp.ne.s32.totalorder %s888_s5, %s616_s6  ;;  %s620_s7 = sshll.u32 %s731_s15, 4  ;;  %s621_s7 = int_to_ptr.vmem [resolvable:$false] %s620_s7 }
 0x13b   : > { %s622_s8 = scalar_lea.vmem %s621_s7, 512  ;;  %p623_p10 = scmp.lt.s32.totalorder %s888_s5, %s621_s7 }
 0x13c   : > { %p618_p8 = pnand %p617_p6, %p821_p7  ;;  %p624_p11 = scmp.lt.s32.totalorder %s622_s8, %s616_s6 }
 0x13e   : > { %p619_p9 = pneg %p618_p8  ;;  %p625_p13 = por %p624_p11, %p623_p10 }
 0x140   : > { %p626_p0 = pnand %p625_p13, %p619_p9 }
 0x142   : > { %629 = shalt.err (!%p626_p0)
}
 0x143   : > { %s630_s28 = scalar_lea.hbm %s885_s29, 256  ;;  %s634_s24 = scalar_lea.hbm %s952_s2, 512 }
 0x144   : > { %p631_p1 = scmp.ne.s32.totalorder %s885_s29, %s630_s28  ;;  %p635_p4 = scmp.lt.u32.totalorder %s885_s29, %s952_s2 }
 0x145   : > { %p636_p5 = scmp.lt.u32.totalorder %s634_s24, %s630_s28  ;;  %p638_p8 = scmp.lt.u32.totalorder %s630_s28, %s885_s29 }
 0x146   : > { %p632_p2 = pnand %p631_p1, %p821_p7 }
 0x147   : > { %p637_p6 = por %p636_p5, %p635_p4 }
 0x148   : > { %p633_p3 = pneg %p632_p2 }
 0x149   : > { %p639_p9 = por %p638_p8, %p637_p6 }
 0x14b   : > { %p640_p10 = pnand %p639_p9, %p633_p3 }
 0x14d   : > { %643 = shalt.err (!%p640_p10)
}
 0x14e   : > { %s732_s23 = smov 128   ;;  %s733_s25 = smov 8  }
 0x14f   : > { %516 = dma.vmem_to_hbm [thread:$0]  (%p821_p7), %s888_s5, 256, %s885_s29, %s892_s14, %s732_s23, %s732_s23, %s733_s25  }
 0x150 PF: > { %p522_p11 = scmp.ge.s32.totalorder %s726_s18, 2  ;;  %s379_s6 = sand.u32 1, %s690_s9  }
 0x151   : > { %s380_s15 = scalar_lea.sflag [#allocation5], %s379_s6 }
 0x152   : > { %p519_p13 = pnand %p522_p11, %p829_p12 }
 0x154   : > { %685 = dma.done.wait (!%p519_p13), %s380_s15, 256  }
 0x155   : > { %687 = vsyncadd (!%p519_p13), %s380_s15, 4294967040  ;;  %s15_s18 = sadd.s32 1, %s726_s18   ;;  %s956_s9 = smov %s694_s10 }
 0x156   : > { %p12_p0 = scmp.ge.s32.totalorder %s15_s18, 6   ;;  %s957_s10 = smov %s698_s11 }
 0x157   : > { %s958_s11 = smov %s834_s3  ;;  %s959_s12 = smov %s706_s13 }
 0x158   : > { %s960_s13 = smov %s837_s4  ;;  %s961_s14 = smov %s718_s16 }
 0x159   : > { %s962_s15 = smov %s722_s17  ;;  %s963_s16 = smov %s966_s21 }
 0x15a   : > { %s964_s17 = smov %s970_s22  ;;  %14 = sbr.rel (!%p12_p0) target bundleno = 6 (0x6), region = 117 }
 0x161   :  { %385 = vsyncpa [#allocation5], 1 }
 0x162   :  { %387 = vsyncpa [#allocation5 + $0x1], 1 }

</bundles_post_ra>
